<compile_context>
chip_gen: v7x
topology: tpu7x:2x2x1
jax: 0.10.0
libtpu: 0.0.40
codegen_flags: <defaults>
</compile_context>

<pallas_src>
import jax
import jax.numpy as jnp
from jax.experimental import pallas as pl
from jax.experimental.pallas import tpu as pltpu

# ---------------- configuration (small, deterministic) ----------------
B = 2            # train batch size
IMG = 32         # image H = W
IN_CH = 3        # image channels
POOL = 4         # pool_size  -> feature map is POOL x POOL
PATCH = IMG // POOL
PATCH_DIM = IN_CH * PATCH * PATCH   # 192
FEAT = 64        # encoder feature dim
NUM_MASKS = 8    # number of mask ids
HID = 64         # projection / predictor hidden dim
PROJ = 32        # projection / predictor output dim

N_IMG = 2 * B                    # cat(view1, view2) along batch
PP = POOL * POOL                 # patches per image (16)
ROWS_ENC = N_IMG * PP            # 64 patch rows
ROWS_Z = N_IMG * NUM_MASKS       # 32 pooled rows
LANE = 128                       # lane-dense padded feature width (per branch)
LANE2 = 2 * LANE                 # both branches packed along lanes


# ---------------- the fused Pallas kernel ----------------
def _detconb_kernel(patches_ref, bd_ref,
                    encw_ref, encb_ref,
                    p1w_ref, p1b_ref,
                    p2w_ref, p2b_ref,
                    q1w_ref, q1b_ref,
                    q2w_ref, q2b_ref,
                    q_ref, tz_ref):
    """Whole DetCon-B forward in one grid step.

    patches_ref : (ROWS_ENC, PATCH_DIM)   shared patch rows (both views)
    bd_ref      : (ROWS_Z, ROWS_ENC)      block-diagonal binary mask matrix
    encw/encb   : (PATCH_DIM, 256)/(1, 256)  online|target encoder, lane-concat
    p1w/p1b     : (256, 256)/(1, 256)        block-diag projection layer 1
    p2w/p2b     : (256, 256)/(1, 256)        block-diag projection layer 2
    q1w/q1b     : (128, 128)/(1, 128)        predictor layer 1 (online only)
    q2w/q2b     : (128, 128)/(1, 128)        predictor layer 2 (online only)
    q_ref       : (ROWS_Z, 128)              predictor output (online)
    tz_ref      : (ROWS_Z, 128)              target projection output
    """
    # encoder for BOTH branches in one matmul: (64,192)@(192,256), ReLU
    feats = jnp.maximum(
        jnp.dot(patches_ref[...], encw_ref[...],
                preferred_element_type=jnp.float32) + encb_ref[...], 0.0)

    # mask pooling: (32,64)@(64,256), divide by per-mask area (EUP reciprocal)
    bd = bd_ref[...]
    pooled = jnp.dot(bd, feats, preferred_element_type=jnp.float32)
    area = jnp.sum(bd, axis=-1, keepdims=True)               # (ROWS_Z, 1)
    pooled = pooled * pl.reciprocal(area + 1e-8, approx=True)

    # projection MLP (block-diagonal weights -> both branches per matmul)
    h = jnp.maximum(
        jnp.dot(pooled, p1w_ref[...], preferred_element_type=jnp.float32)
        + p1b_ref[...], 0.0)
    z = jnp.dot(h, p2w_ref[...], preferred_element_type=jnp.float32) + p2b_ref[...]

    # target branch output = right half of the packed lanes
    tz_ref[...] = z[:, LANE:].astype(tz_ref.dtype)

    # predictor MLP on the online half (left 128 lanes)
    z_on = z[:, :LANE]
    ph = jnp.maximum(
        jnp.dot(z_on, q1w_ref[...], preferred_element_type=jnp.float32)
        + q1b_ref[...], 0.0)
    q = jnp.dot(ph, q2w_ref[...], preferred_element_type=jnp.float32) + q2b_ref[...]
    q_ref[...] = q.astype(q_ref.dtype)


def detconb_fused_call(patches, bd_masks, packed, pred_padded):
    """One pallas_call: both branches + predictor, single grid step."""
    full = lambda shape: pl.BlockSpec(shape, lambda i: tuple(0 for _ in shape))
    return pl.pallas_call(
        _detconb_kernel,
        out_shape=(jax.ShapeDtypeStruct((ROWS_Z, LANE), jnp.float32),
                   jax.ShapeDtypeStruct((ROWS_Z, LANE), jnp.float32)),
        grid_spec=pltpu.PrefetchScalarGridSpec(
            num_scalar_prefetch=0,
            grid=(1,),
            in_specs=[
                full((ROWS_ENC, PATCH_DIM)),
                full((ROWS_Z, ROWS_ENC)),
                full((PATCH_DIM, LANE2)), full((1, LANE2)),
                full((LANE2, LANE2)), full((1, LANE2)),
                full((LANE2, LANE2)), full((1, LANE2)),
                full((LANE, LANE)), full((1, LANE)),
                full((LANE, LANE)), full((1, LANE)),
            ],
            out_specs=[full((ROWS_Z, LANE)), full((ROWS_Z, LANE))],
        ),
        compiler_params=pltpu.CompilerParams(
            dimension_semantics=("arbitrary",)),
    )(patches, bd_masks,
      packed["enc_w"], packed["enc_b"],
      packed["proj1_w"], packed["proj1_b"],
      packed["proj2_w"], packed["proj2_b"],
      pred_padded["pred1_w"], pred_padded["pred1_b"],
      pred_padded["pred2_w"], pred_padded["pred2_b"])


# ---------------- glue (plain JAX, layout only) ----------------
def convert_binary_mask(m, pool_size, num_masks):
    """m: (N,1,H,W) int mask ids -> (N, num_masks, pool*pool) binary masks."""
    n, _, h, w = m.shape
    onehot = jax.nn.one_hot(m[:, 0], num_masks, dtype=jnp.float32)  # (N,H,W,NM)
    onehot = jnp.transpose(onehot, (0, 3, 1, 2))                    # (N,NM,H,W)
    ph, pw = h // pool_size, w // pool_size
    pooled = onehot.reshape(n, num_masks, pool_size, ph, pool_size, pw)
    pooled = pooled.mean(axis=(3, 5))                               # (N,NM,P,P)
    ids = jnp.argmax(pooled, axis=1)                                # (N,P,P)
    binm = jax.nn.one_hot(ids, num_masks, dtype=jnp.float32)        # (N,P,P,NM)
    binm = jnp.transpose(binm, (0, 3, 1, 2))
    return binm.reshape(n, num_masks, pool_size * pool_size)


def block_diag_masks(bin_masks):
    """(N, NM, PP) -> (N*NM, N*PP) block-diagonal mask matrix.

    Lets mask pooling run as one lane-dense 2-D MXU matmul inside the fused
    kernel instead of a per-image batched dot.
    """
    eye = jnp.eye(N_IMG, dtype=jnp.float32)
    bd = jnp.einsum("nmp,nk->nmkp", bin_masks, eye)
    return bd.reshape(N_IMG * NUM_MASKS, N_IMG * PP)


def patchify(x):
    """NCHW image -> (N*P*P, IN_CH*PATCH*PATCH) patch rows (conv-as-matmul)."""
    n = x.shape[0]
    x = x.reshape(n, IN_CH, POOL, PATCH, POOL, PATCH)
    x = jnp.transpose(x, (0, 2, 4, 1, 3, 5))          # (N, P, P, C, ph, pw)
    return x.reshape(n * POOL * POOL, PATCH_DIM)


def _pad_to(x, shape):
    return jnp.pad(x, [(0, t - s) for s, t in zip(x.shape, shape)])


def _pack_branch_params(online, target):
    """Pack online/target along the lane axis (encoder: concat, projection:
    block-diagonal) and zero-pad feature dims to 128 lanes per branch.
    Zero padding + block-diagonal zeros keep this numerically exact."""
    enc_w = jnp.concatenate([_pad_to(online["enc"]["w"], (PATCH_DIM, LANE)),
                             _pad_to(target["enc"]["w"], (PATCH_DIM, LANE))],
                            axis=1)
    enc_b = jnp.concatenate([_pad_to(online["enc"]["b"], (1, LANE)),
                             _pad_to(target["enc"]["b"], (1, LANE))], axis=1)

    def blockdiag(name):
        ow = _pad_to(online[name]["w"], (LANE, LANE))
        tw = _pad_to(target[name]["w"], (LANE, LANE))
        zeros = jnp.zeros((LANE, LANE), jnp.float32)
        w = jnp.concatenate(
            [jnp.concatenate([ow, zeros], axis=1),
             jnp.concatenate([zeros, tw], axis=1)], axis=0)        # (256, 256)
        b = jnp.concatenate([_pad_to(online[name]["b"], (1, LANE)),
                             _pad_to(target[name]["b"], (1, LANE))], axis=1)
        return w, b

    p1w, p1b = blockdiag("proj1")
    p2w, p2b = blockdiag("proj2")
    return {"enc_w": enc_w, "enc_b": enc_b,
            "proj1_w": p1w, "proj1_b": p1b,
            "proj2_w": p2w, "proj2_b": p2b}


def _pad_pred_params(pred):
    return {
        "pred1_w": _pad_to(pred["pred1"]["w"], (LANE, LANE)),
        "pred1_b": _pad_to(pred["pred1"]["b"], (1, LANE)),
        "pred2_w": _pad_to(pred["pred2"]["w"], (LANE, LANE)),
        "pred2_b": _pad_to(pred["pred2"]["b"], (1, LANE)),
    }


def detconb_forward(online_params, target_params, pred_params,
                    view1, view2, mm, masks):
    # masks: (B, num_views, 1, H, W)  ->  cat along batch like the torch code
    m = jnp.concatenate([masks[:, i] for i in range(masks.shape[1])], axis=0)
    bin_masks = convert_binary_mask(m, POOL, NUM_MASKS)       # (N_IMG, NM, PP)
    bd_masks = block_diag_masks(bin_masks)                    # (ROWS_Z, ROWS_ENC)

    x = jnp.concatenate([view1, view2], axis=0)               # (2B, 3, H, W)
    patches = patchify(x)                                     # (ROWS_ENC, PATCH_DIM)

    # momentum update of the target network (no-grad in torch)
    new_target = jax.tree_util.tree_map(
        lambda t, o: mm * t + (1.0 - mm) * o, target_params, online_params)

    # whole model (both branches + predictor) in ONE fused Pallas call
    packed = _pack_branch_params(online_params, new_target)
    q_pad, tz_pad = detconb_fused_call(patches, bd_masks, packed,
                                       _pad_pred_params(pred_params))

    q = q_pad[:, :PROJ].reshape(N_IMG, NUM_MASKS, PROJ)
    target_z = jax.lax.stop_gradient(
        tz_pad[:, :PROJ].reshape(N_IMG, NUM_MASKS, PROJ))

    inds = jnp.broadcast_to(jnp.arange(NUM_MASKS, dtype=jnp.int32),
                            (N_IMG, NUM_MASKS))
    return (q, target_z, inds, inds), new_target


# ---------------- deterministic parameter init ----------------
def _lin_init(key, fan_in, fan_out):
    w = jax.random.normal(key, (fan_in, fan_out), jnp.float32) / jnp.sqrt(
        jnp.float32(fan_in))
    b = jnp.zeros((1, fan_out), jnp.float32)
    return {"w": w, "b": b}


def init_params(key):
    k = jax.random.split(key, 5)
    online = {
        "enc":   _lin_init(k[0], PATCH_DIM, FEAT),
        "proj1": _lin_init(k[1], FEAT, HID),
        "proj2": _lin_init(k[2], HID, PROJ),
    }
    # _initializes_target_network: exact copy of the online network
    target = jax.tree_util.tree_map(lambda p: p, online)
    pred = {
        "pred1": _lin_init(k[3], PROJ, HID),
        "pred2": _lin_init(k[4], HID, PROJ),
    }
    return online, target, pred


# ---------------- main ----------------
if __name__ == "__main__":
    key = jax.random.PRNGKey(0)
    k_params, k_v1, k_v2, k_m = jax.random.split(key, 4)

    online_params, target_params, pred_params = init_params(k_params)

    view1 = jax.random.normal(k_v1, (B, IN_CH, IMG, IMG), jnp.float32)
    view2 = jax.random.normal(k_v2, (B, IN_CH, IMG, IMG), jnp.float32)
    masks = jax.random.randint(k_m, (B, 2, 1, IMG, IMG), 0, NUM_MASKS,
                               dtype=jnp.int32)
    mm = jnp.float32(0.99)

    fwd = jax.jit(detconb_forward)
    (q, target_z, pinds, tinds), _ = fwd(online_params, target_params,
                                         pred_params, view1, view2, mm, masks)
    jax.block_until_ready((q, target_z, pinds, tinds))

    assert q.shape == (2 * B, NUM_MASKS, PROJ)
    assert target_z.shape == (2 * B, NUM_MASKS, PROJ)
    assert pinds.shape == (2 * B, NUM_MASKS)
    assert tinds.shape == (2 * B, NUM_MASKS)
    assert bool(jnp.all(jnp.isfinite(q))) and bool(jnp.all(jnp.isfinite(target_z)))
    print("KERNEL_OK")
</pallas_src>

<mosaic_0001>
module attributes {stable_mosaic.version = 11 : i64} {
  func.func @_detconb_kernel(%arg0: i32, %arg1: memref<64x192xf32, #tpu.memory_space<vmem>>, %arg2: memref<32x64xf32, #tpu.memory_space<vmem>>, %arg3: memref<192x256xf32, #tpu.memory_space<vmem>>, %arg4: memref<1x256xf32, #tpu.memory_space<vmem>>, %arg5: memref<256x256xf32, #tpu.memory_space<vmem>>, %arg6: memref<1x256xf32, #tpu.memory_space<vmem>>, %arg7: memref<256x256xf32, #tpu.memory_space<vmem>>, %arg8: memref<1x256xf32, #tpu.memory_space<vmem>>, %arg9: memref<128x128xf32, #tpu.memory_space<vmem>>, %arg10: memref<1x128xf32, #tpu.memory_space<vmem>>, %arg11: memref<128x128xf32, #tpu.memory_space<vmem>>, %arg12: memref<1x128xf32, #tpu.memory_space<vmem>>, %arg13: memref<32x128xf32, #tpu.memory_space<vmem>>, %arg14: memref<32x128xf32, #tpu.memory_space<vmem>>) attributes {dimension_semantics = [#tpu.dimension_semantics<arbitrary>], iteration_bounds = array<i64: 1>, scalar_prefetch = 0 : i64, scratch_operands = 0 : i64, tpu.core_type = #tpu.core_type<tc>, window_params = [{pipeline_mode = #tpu.pipeline_mode<synchronous>, transform_indices = @transform_0, window_bounds = array<i64: 64, 192>}, {pipeline_mode = #tpu.pipeline_mode<synchronous>, transform_indices = @transform_1, window_bounds = array<i64: 32, 64>}, {pipeline_mode = #tpu.pipeline_mode<synchronous>, transform_indices = @transform_2, window_bounds = array<i64: 192, 256>}, {pipeline_mode = #tpu.pipeline_mode<synchronous>, transform_indices = @transform_3, window_bounds = array<i64: 1, 256>}, {pipeline_mode = #tpu.pipeline_mode<synchronous>, transform_indices = @transform_4, window_bounds = array<i64: 256, 256>}, {pipeline_mode = #tpu.pipeline_mode<synchronous>, transform_indices = @transform_5, window_bounds = array<i64: 1, 256>}, {pipeline_mode = #tpu.pipeline_mode<synchronous>, transform_indices = @transform_6, window_bounds = array<i64: 256, 256>}, {pipeline_mode = #tpu.pipeline_mode<synchronous>, transform_indices = @transform_7, window_bounds = array<i64: 1, 256>}, {pipeline_mode = #tpu.pipeline_mode<synchronous>, transform_indices = @transform_8, window_bounds = array<i64: 128, 128>}, {pipeline_mode = #tpu.pipeline_mode<synchronous>, transform_indices = @transform_9, window_bounds = array<i64: 1, 128>}, {pipeline_mode = #tpu.pipeline_mode<synchronous>, transform_indices = @transform_10, window_bounds = array<i64: 128, 128>}, {pipeline_mode = #tpu.pipeline_mode<synchronous>, transform_indices = @transform_11, window_bounds = array<i64: 1, 128>}, {pipeline_mode = #tpu.pipeline_mode<synchronous>, transform_indices = @transform_12, window_bounds = array<i64: 32, 128>}, {pipeline_mode = #tpu.pipeline_mode<synchronous>, transform_indices = @transform_13, window_bounds = array<i64: 32, 128>}]} {
    %c0 = arith.constant 0 : index
    %c0_0 = arith.constant 0 : index
    %0 = vector.load %arg1[%c0, %c0_0] : memref<64x192xf32, #tpu.memory_space<vmem>>, vector<64x192xf32>
    %c0_1 = arith.constant 0 : index
    %c0_2 = arith.constant 0 : index
    %1 = vector.load %arg3[%c0_1, %c0_2] : memref<192x256xf32, #tpu.memory_space<vmem>>, vector<192x256xf32>
    %cst = arith.constant dense<0.000000e+00> : vector<64x256xf32>
    %2 = tpu.matmul %0, %1, %cst {dimension_numbers = #tpu.dot_dimension_numbers<[1], [0], [0], [1], [0, 0, 1, 1], [], []>} : vector<64x192xf32>, vector<192x256xf32>, vector<64x256xf32> -> vector<64x256xf32>
    %c0_3 = arith.constant 0 : index
    %c0_4 = arith.constant 0 : index
    %3 = vector.load %arg4[%c0_3, %c0_4] : memref<1x256xf32, #tpu.memory_space<vmem>>, vector<1x256xf32>
    %4 = vector.broadcast %3 : vector<1x256xf32> to vector<64x256xf32>
    %5 = arith.addf %2, %4 : vector<64x256xf32>
    %cst_5 = arith.constant 0.000000e+00 : f32
    %6 = vector.broadcast %cst_5 : f32 to vector<64x256xf32>
    %7 = arith.maximumf %5, %6 : vector<64x256xf32>
    %c0_6 = arith.constant 0 : index
    %c0_7 = arith.constant 0 : index
    %8 = vector.load %arg2[%c0_6, %c0_7] : memref<32x64xf32, #tpu.memory_space<vmem>>, vector<32x64xf32>
    %cst_8 = arith.constant dense<0.000000e+00> : vector<32x256xf32>
    %9 = tpu.matmul %8, %7, %cst_8 {dimension_numbers = #tpu.dot_dimension_numbers<[1], [0], [0], [1], [0, 0, 1, 1], [], []>} : vector<32x64xf32>, vector<64x256xf32>, vector<32x256xf32> -> vector<32x256xf32>
    %cst_9 = arith.constant dense<0.000000e+00> : vector<32xf32>
    %10 = vector.multi_reduction <add>, %8, %cst_9 [1] : vector<32x64xf32> to vector<32xf32>
    %11 = vector.shape_cast %10 : vector<32xf32> to vector<32x1xf32>
    %cst_10 = arith.constant 9.99999993E-9 : f32
    %12 = vector.broadcast %cst_10 : f32 to vector<32x1xf32>
    %13 = arith.addf %11, %12 : vector<32x1xf32>
    %14 = tpu.reciprocal %13 {approx = true} : vector<32x1xf32> -> vector<32x1xf32>
    %15 = vector.broadcast %14 : vector<32x1xf32> to vector<32x256xf32>
    %16 = arith.mulf %9, %15 : vector<32x256xf32>
    %c0_11 = arith.constant 0 : index
    %c0_12 = arith.constant 0 : index
    %17 = vector.load %arg5[%c0_11, %c0_12] : memref<256x256xf32, #tpu.memory_space<vmem>>, vector<256x256xf32>
    %cst_13 = arith.constant dense<0.000000e+00> : vector<32x256xf32>
    %18 = tpu.matmul %16, %17, %cst_13 {dimension_numbers = #tpu.dot_dimension_numbers<[1], [0], [0], [1], [0, 0, 1, 1], [], []>} : vector<32x256xf32>, vector<256x256xf32>, vector<32x256xf32> -> vector<32x256xf32>
    %c0_14 = arith.constant 0 : index
    %c0_15 = arith.constant 0 : index
    %19 = vector.load %arg6[%c0_14, %c0_15] : memref<1x256xf32, #tpu.memory_space<vmem>>, vector<1x256xf32>
    %20 = vector.broadcast %19 : vector<1x256xf32> to vector<32x256xf32>
    %21 = arith.addf %18, %20 : vector<32x256xf32>
    %cst_16 = arith.constant 0.000000e+00 : f32
    %22 = vector.broadcast %cst_16 : f32 to vector<32x256xf32>
    %23 = arith.maximumf %21, %22 : vector<32x256xf32>
    %c0_17 = arith.constant 0 : index
    %c0_18 = arith.constant 0 : index
    %24 = vector.load %arg7[%c0_17, %c0_18] : memref<256x256xf32, #tpu.memory_space<vmem>>, vector<256x256xf32>
    %cst_19 = arith.constant dense<0.000000e+00> : vector<32x256xf32>
    %25 = tpu.matmul %23, %24, %cst_19 {dimension_numbers = #tpu.dot_dimension_numbers<[1], [0], [0], [1], [0, 0, 1, 1], [], []>} : vector<32x256xf32>, vector<256x256xf32>, vector<32x256xf32> -> vector<32x256xf32>
    %c0_20 = arith.constant 0 : index
    %c0_21 = arith.constant 0 : index
    %26 = vector.load %arg8[%c0_20, %c0_21] : memref<1x256xf32, #tpu.memory_space<vmem>>, vector<1x256xf32>
    %27 = vector.broadcast %26 : vector<1x256xf32> to vector<32x256xf32>
    %28 = arith.addf %25, %27 : vector<32x256xf32>
    %29 = vector.extract_strided_slice %28 {offsets = [0, 128], sizes = [32, 128], strides = [1, 1]} : vector<32x256xf32> to vector<32x128xf32>
    %c0_22 = arith.constant 0 : index
    %c0_23 = arith.constant 0 : index
    %30 = vector.load %arg14[%c0_22, %c0_23] : memref<32x128xf32, #tpu.memory_space<vmem>>, vector<32x128xf32>
    tpu.vector_store %arg14[%c0_22, %c0_23], %29 {strides = array<i32>} : memref<32x128xf32, #tpu.memory_space<vmem>>, vector<32x128xf32>,
    %31 = vector.extract_strided_slice %28 {offsets = [0, 0], sizes = [32, 128], strides = [1, 1]} : vector<32x256xf32> to vector<32x128xf32>
    %c0_24 = arith.constant 0 : index
    %c0_25 = arith.constant 0 : index
    %32 = vector.load %arg9[%c0_24, %c0_25] : memref<128x128xf32, #tpu.memory_space<vmem>>, vector<128x128xf32>
    %cst_26 = arith.constant dense<0.000000e+00> : vector<32x128xf32>
    %33 = tpu.matmul %31, %32, %cst_26 {dimension_numbers = #tpu.dot_dimension_numbers<[1], [0], [0], [1], [0, 0, 1, 1], [], []>} : vector<32x128xf32>, vector<128x128xf32>, vector<32x128xf32> -> vector<32x128xf32>
    %c0_27 = arith.constant 0 : index
    %c0_28 = arith.constant 0 : index
    %34 = vector.load %arg10[%c0_27, %c0_28] : memref<1x128xf32, #tpu.memory_space<vmem>>, vector<1x128xf32>
    %35 = vector.broadcast %34 : vector<1x128xf32> to vector<32x128xf32>
    %36 = arith.addf %33, %35 : vector<32x128xf32>
    %cst_29 = arith.constant 0.000000e+00 : f32
    %37 = vector.broadcast %cst_29 : f32 to vector<32x128xf32>
    %38 = arith.maximumf %36, %37 : vector<32x128xf32>
    %c0_30 = arith.constant 0 : index
    %c0_31 = arith.constant 0 : index
    %39 = vector.load %arg11[%c0_30, %c0_31] : memref<128x128xf32, #tpu.memory_space<vmem>>, vector<128x128xf32>
    %cst_32 = arith.constant dense<0.000000e+00> : vector<32x128xf32>
    %40 = tpu.matmul %38, %39, %cst_32 {dimension_numbers = #tpu.dot_dimension_numbers<[1], [0], [0], [1], [0, 0, 1, 1], [], []>} : vector<32x128xf32>, vector<128x128xf32>, vector<32x128xf32> -> vector<32x128xf32>
    %c0_33 = arith.constant 0 : index
    %c0_34 = arith.constant 0 : index
    %41 = vector.load %arg12[%c0_33, %c0_34] : memref<1x128xf32, #tpu.memory_space<vmem>>, vector<1x128xf32>
    %42 = vector.broadcast %41 : vector<1x128xf32> to vector<32x128xf32>
    %43 = arith.addf %40, %42 : vector<32x128xf32>
    %c0_35 = arith.constant 0 : index
    %c0_36 = arith.constant 0 : index
    %44 = vector.load %arg13[%c0_35, %c0_36] : memref<32x128xf32, #tpu.memory_space<vmem>>, vector<32x128xf32>
    tpu.vector_store %arg13[%c0_35, %c0_36], %43 {strides = array<i32>} : memref<32x128xf32, #tpu.memory_space<vmem>>, vector<32x128xf32>,
    return
  }
  func.func @transform_0(%arg0: i32) -> (i32, i32) {
    %c0_i32 = arith.constant 0 : i32
    %c0_i32_0 = arith.constant 0 : i32
    %c0_i32_1 = arith.constant 0 : i32
    return %c0_i32, %c0_i32_0 : i32, i32
  }
  func.func @transform_1(%arg0: i32) -> (i32, i32) {
    %c0_i32 = arith.constant 0 : i32
    %c0_i32_0 = arith.constant 0 : i32
    %c0_i32_1 = arith.constant 0 : i32
    return %c0_i32, %c0_i32_0 : i32, i32
  }
  func.func @transform_2(%arg0: i32) -> (i32, i32) {
    %c0_i32 = arith.constant 0 : i32
    %c0_i32_0 = arith.constant 0 : i32
    %c0_i32_1 = arith.constant 0 : i32
    return %c0_i32, %c0_i32_0 : i32, i32
  }
  func.func @transform_3(%arg0: i32) -> (i32, i32) {
    %c0_i32 = arith.constant 0 : i32
    %c0_i32_0 = arith.constant 0 : i32
    %c0_i32_1 = arith.constant 0 : i32
    return %c0_i32, %c0_i32_0 : i32, i32
  }
  func.func @transform_4(%arg0: i32) -> (i32, i32) {
    %c0_i32 = arith.constant 0 : i32
    %c0_i32_0 = arith.constant 0 : i32
    %c0_i32_1 = arith.constant 0 : i32
    return %c0_i32, %c0_i32_0 : i32, i32
  }
  func.func @transform_5(%arg0: i32) -> (i32, i32) {
    %c0_i32 = arith.constant 0 : i32
    %c0_i32_0 = arith.constant 0 : i32
    %c0_i32_1 = arith.constant 0 : i32
    return %c0_i32, %c0_i32_0 : i32, i32
  }
  func.func @transform_6(%arg0: i32) -> (i32, i32) {
    %c0_i32 = arith.constant 0 : i32
    %c0_i32_0 = arith.constant 0 : i32
    %c0_i32_1 = arith.constant 0 : i32
    return %c0_i32, %c0_i32_0 : i32, i32
  }
  func.func @transform_7(%arg0: i32) -> (i32, i32) {
    %c0_i32 = arith.constant 0 : i32
    %c0_i32_0 = arith.constant 0 : i32
    %c0_i32_1 = arith.constant 0 : i32
    return %c0_i32, %c0_i32_0 : i32, i32
  }
  func.func @transform_8(%arg0: i32) -> (i32, i32) {
    %c0_i32 = arith.constant 0 : i32
    %c0_i32_0 = arith.constant 0 : i32
    %c0_i32_1 = arith.constant 0 : i32
    return %c0_i32, %c0_i32_0 : i32, i32
  }
  func.func @transform_9(%arg0: i32) -> (i32, i32) {
    %c0_i32 = arith.constant 0 : i32
    %c0_i32_0 = arith.constant 0 : i32
    %c0_i32_1 = arith.constant 0 : i32
    return %c0_i32, %c0_i32_0 : i32, i32
  }
  func.func @transform_10(%arg0: i32) -> (i32, i32) {
    %c0_i32 = arith.constant 0 : i32
    %c0_i32_0 = arith.constant 0 : i32
    %c0_i32_1 = arith.constant 0 : i32
    return %c0_i32, %c0_i32_0 : i32, i32
  }
  func.func @transform_11(%arg0: i32) -> (i32, i32) {
    %c0_i32 = arith.constant 0 : i32
    %c0_i32_0 = arith.constant 0 : i32
    %c0_i32_1 = arith.constant 0 : i32
    return %c0_i32, %c0_i32_0 : i32, i32
  }
  func.func @transform_12(%arg0: i32) -> (i32, i32) {
    %c0_i32 = arith.constant 0 : i32
    %c0_i32_0 = arith.constant 0 : i32
    %c0_i32_1 = arith.constant 0 : i32
    return %c0_i32, %c0_i32_0 : i32, i32
  }
  func.func @transform_13(%arg0: i32) -> (i32, i32) {
    %c0_i32 = arith.constant 0 : i32
    %c0_i32_0 = arith.constant 0 : i32
    %c0_i32_1 = arith.constant 0 : i32
    return %c0_i32, %c0_i32_0 : i32, i32
  }
}

</mosaic_0001>

<bundles_post_ra>
// kernel: detconb_forward.1
= control target key start
LH: loop header
LB: loop body
LE: loop exit
PB: predicated region body
PF: predicated region fallthrough
CT: control target
= control target key end

     0   :  { %vm119_vm0 = vcmask 523264   ;;  %s2231_s2 = inlined_call_operand.vmem [shape: f32[192,256], index: 2, kind: input, shape index: {}]   ;;  %s2232_s0 = inlined_call_operand.vmem [shape: f32[64,192], index: 0, kind: input, shape index: {}]   ;;  %s2233_s1 = inlined_call_operand.vmem [shape: f32[32,64], index: 1, kind: input, shape index: {}]   ;;  %s2234_s3 = inlined_call_operand.vmem [shape: f32[1,256], index: 3, kind: input, shape index: {}]   ;;  %s2235_s4 = inlined_call_operand.vmem [shape: f32[256,256], index: 4, kind: input, shape index: {}]   ;;  %s2236_s6 = inlined_call_operand.vmem [shape: f32[256,256], index: 6, kind: input, shape index: {}]   ;;  %s2237_s8 = inlined_call_operand.vmem [shape: f32[128,128], index: 8, kind: input, shape index: {}]   ;;  %s2238_s5 = inlined_call_operand.vmem [shape: f32[1,256], index: 5, kind: input, shape index: {}]   ;;  %s2239_s10 = inlined_call_operand.vmem [shape: f32[128,128], index: 10, kind: input, shape index: {}]   ;;  %s2240_s7 = inlined_call_operand.vmem [shape: f32[1,256], index: 7, kind: input, shape index: {}]   ;;  %s2241_s13 = inlined_call_operand.vmem [shape: f32[32,128], index: 13, kind: output, shape index: {1}]   ;;  %s2242_s9 = inlined_call_operand.vmem [shape: f32[1,128], index: 9, kind: input, shape index: {}]   ;;  %s2243_s11 = inlined_call_operand.vmem [shape: f32[1,128], index: 11, kind: input, shape index: {}]   ;;  %s2244_s12 = inlined_call_operand.vmem [shape: f32[32,128], index: 12, kind: output, shape index: {0}]  }
   0x1   :  { %v60_v0 = vld [vmem:[%s2231_s2 + $0x8] sm:$0xff]  ;;  %v62_v1 = vld [vmem:[%s2231_s2 + $0x18] sm:$0xff]  ;;  %v59_v2 = vld [vmem:[%s2231_s2] sm:$0xff] }
   0x2   :  { %v1110_v3 = vpack.c.bf16 %v62_v1, %v60_v0  ;;  %v61_v4 = vld [vmem:[%s2231_s2 + $0x10] sm:$0xff]  ;;  %v64_v5 = vld [vmem:[%s2231_s2 + $0x28] sm:$0xff]  ;;  %v66_v6 = vld [vmem:[%s2231_s2 + $0x38] sm:$0xff] }
   0x3   :  { %v1112_v7 = vpack.c.bf16 %v61_v4, %v59_v2  ;;  %v1114_v8 = vpack.c.bf16 %v66_v6, %v64_v5  ;;  %v63_v9 = vld [vmem:[%s2231_s2 + $0x20] sm:$0xff]  ;;  %v65_v10 = vld [vmem:[%s2231_s2 + $0x30] sm:$0xff]  ;;  %v68_v11 = vld [vmem:[%s2231_s2 + $0x48] sm:$0xff] }
   0x4   :  { %1111 = vmatprep.subr.bf16.mxu0 %v1110_v3  ;;  %v70_v12 = vld [vmem:[%s2231_s2 + $0x58] sm:$0xff]  ;;  %v1116_v13 = vpack.c.bf16 %v65_v10, %v63_v9  ;;  %v67_v15 = vld [vmem:[%s2231_s2 + $0x40] sm:$0xff]  ;;  %v69_v16 = vld [vmem:[%s2231_s2 + $0x50] sm:$0xff] }
   0x5   :  { %1113 = vmatpush1.bf16.msra.mxu0 %v1112_v7  ;;  %v1118_v14 = vpack.c.bf16 %v70_v12, %v68_v11  ;;  %v72_v17 = vld [vmem:[%s2231_s2 + $0x68] sm:$0xff]  ;;  %v74_v18 = vld [vmem:[%s2231_s2 + $0x78] sm:$0xff]  ;;  %v1120_v19 = vpack.c.bf16 %v69_v16, %v67_v15  ;;  %v71_v21 = vld [vmem:[%s2231_s2 + $0x60] sm:$0xff] }
   0x6   :  { %1115 = vmatprep.subr.bf16.mxu0 %v1114_v8  ;;  %v1122_v20 = vpack.c.bf16 %v74_v18, %v72_v17  ;;  %v73_v22 = vld [vmem:[%s2231_s2 + $0x70] sm:$0xff]  ;;  %v76_v23 = vld [vmem:[%s2231_s2 + $0x88] sm:$0xff]  ;;  %v78_v24 = vld [vmem:[%s2231_s2 + $0x98] sm:$0xff] }
   0x7   :  { %v1124_v25 = vpack.c.bf16 %v73_v22, %v71_v21  ;;  %v1126_v26 = vpack.c.bf16 %v78_v24, %v76_v23  ;;  %v75_v27 = vld [vmem:[%s2231_s2 + $0x80] sm:$0xff]  ;;  %v77_v28 = vld [vmem:[%s2231_s2 + $0x90] sm:$0xff]  ;;  %v80_v29 = vld [vmem:[%s2231_s2 + $0xa8] sm:$0xff]  ;;  %v1391_v24 = vmov 0.0  }
   0x8   :  { %v82_v30 = vld [vmem:[%s2231_s2 + $0xb8] sm:$0xff]  ;;  %v1128_v31 = vpack.c.bf16 %v77_v28, %v75_v27  ;;  %v44_v32 = vld [vmem:[%s2232_s0 + $0x8] sm:$0xff]  ;;  %v79_v34 = vld [vmem:[%s2231_s2 + $0xa0] sm:$0xff]  ;;  %353 = vmatprep.mubr.f32.mxu1 %v1391_v24 }
   0x9   :  { %1117 = vmatpush1.bf16.msra.mxu0 %v1116_v13  ;;  %v1130_v33 = vpack.c.bf16 %v82_v30, %v80_v29  ;;  %v81_v35 = vld [vmem:[%s2231_s2 + $0xb0] sm:$0xff]  ;;  %980 = vmatprep.mubr.msk.f32.mxu0 %vm119_vm0, %v44_v32  ;;  %v84_v36 = vld [vmem:[%s2231_s2 + $0xc8] sm:$0xff]  ;;  %v86_v37 = vld [vmem:[%s2231_s2 + $0xd8] sm:$0xff] }
   0xa   :  { %1119 = vmatprep.subr.bf16.mxu0 %v1118_v14  ;;  %v1132_v38 = vpack.c.bf16 %v81_v35, %v79_v34  ;;  %v1134_v39 = vpack.c.bf16 %v86_v37, %v84_v36  ;;  %v83_v40 = vld [vmem:[%s2231_s2 + $0xc0] sm:$0xff]  ;;  %v85_v41 = vld [vmem:[%s2231_s2 + $0xd0] sm:$0xff]  ;;  %v88_v42 = vld [vmem:[%s2231_s2 + $0xe8] sm:$0xff] }
   0xb   :  { %v90_v43 = vld [vmem:[%s2231_s2 + $0xf8] sm:$0xff]  ;;  %v1136_v44 = vpack.c.bf16 %v85_v41, %v83_v40  ;;  %v87_v46 = vld [vmem:[%s2231_s2 + $0xe0] sm:$0xff]  ;;  %v89_v47 = vld [vmem:[%s2231_s2 + $0xf0] sm:$0xff] }
   0xc   :  { %v1138_v45 = vpack.c.bf16 %v90_v43, %v88_v42  ;;  %v92_v48 = vld [vmem:[%s2231_s2 + $0x108] sm:$0xff]  ;;  %v94_v49 = vld [vmem:[%s2231_s2 + $0x118] sm:$0xff]  ;;  %v1140_v50 = vpack.c.bf16 %v89_v47, %v87_v46  ;;  %v91_v52 = vld [vmem:[%s2231_s2 + $0x100] sm:$0xff] }
   0xd   :  { %1121 = vmatpush1.bf16.msra.mxu0 %v1120_v19  ;;  %v1142_v51 = vpack.c.bf16 %v94_v49, %v92_v48  ;;  %v93_v53 = vld [vmem:[%s2231_s2 + $0x110] sm:$0xff]  ;;  %v96_v54 = vld [vmem:[%s2231_s2 + $0x128] sm:$0xff]  ;;  %v98_v55 = vld [vmem:[%s2231_s2 + $0x138] sm:$0xff] }
   0xe   :  { %1123 = vmatprep.subr.bf16.mxu0 %v1122_v20  ;;  %v1144_v56 = vpack.c.bf16 %v93_v53, %v91_v52  ;;  %v1146_v57 = vpack.c.bf16 %v98_v55, %v96_v54  ;;  %v95_v58 = vld [vmem:[%s2231_s2 + $0x120] sm:$0xff]  ;;  %v97_v59 = vld [vmem:[%s2231_s2 + $0x130] sm:$0xff]  ;;  %v100_v60 = vld [vmem:[%s2231_s2 + $0x148] sm:$0xff] }
   0xf   :  { %v102_v61 = vld [vmem:[%s2231_s2 + $0x158] sm:$0xff]  ;;  %v1148_v62 = vpack.c.bf16 %v97_v59, %v95_v58  ;;  %v99_v0 = vld [vmem:[%s2231_s2 + $0x140] sm:$0xff]  ;;  %v101_v1 = vld [vmem:[%s2231_s2 + $0x150] sm:$0xff] }
  0x10   :  { %v1150_v63 = vpack.c.bf16 %v102_v61, %v100_v60  ;;  %v104_v2 = vld [vmem:[%s2231_s2 + $0x168] sm:$0xff]  ;;  %v106_v3 = vld [vmem:[%s2231_s2 + $0x178] sm:$0xff]  ;;  %v1152_v4 = vpack.c.bf16 %v101_v1, %v99_v0  ;;  %v103_v6 = vld [vmem:[%s2231_s2 + $0x160] sm:$0xff] }
  0x11   :  { %1125 = vmatpush1.bf16.msra.mxu0 %v1124_v25  ;;  %v1154_v5 = vpack.c.bf16 %v106_v3, %v104_v2  ;;  %v105_v7 = vld [vmem:[%s2231_s2 + $0x170] sm:$0xff]  ;;  %v43_v9 = vld [vmem:[%s2232_s0] sm:$0xff]  ;;  %v46_v10 = vld [vmem:[%s2232_s0 + $0x18] sm:$0xff] }
  0x12   :  { %1127 = vmatprep.subr.bf16.mxu0 %v1126_v26  ;;  %v1156_v8 = vpack.c.bf16 %v105_v7, %v103_v6  ;;  %v45_v11 = vld [vmem:[%s2232_s0 + $0x10] sm:$0xff]  ;;  %v48_v12 = vld [vmem:[%s2232_s0 + $0x28] sm:$0xff]  ;;  %v47_v13 = vld [vmem:[%s2232_s0 + $0x20] sm:$0xff] }
  0x13   :  { %v50_v14 = vld [vmem:[%s2232_s0 + $0x38] sm:$0xff]  ;;  %v49_v15 = vld [vmem:[%s2232_s0 + $0x30] sm:$0xff]  ;;  %v52_v16 = vld [vmem:[%s2232_s0 + $0x48] sm:$0xff] }
  0x14   :  { %v51_v17 = vld [vmem:[%s2232_s0 + $0x40] sm:$0xff]  ;;  %v54_v18 = vld [vmem:[%s2232_s0 + $0x58] sm:$0xff]  ;;  %v53_v19 = vld [vmem:[%s2232_s0 + $0x50] sm:$0xff] }
  0x15   :  { %1129 = vmatpush1.bf16.msra.mxu0 %v1128_v31  ;;  %v56_v20 = vld [vmem:[%s2232_s0 + $0x68] sm:$0xff]  ;;  %v55_v21 = vld [vmem:[%s2232_s0 + $0x60] sm:$0xff]  ;;  %v58_v22 = vld [vmem:[%s2232_s0 + $0x78] sm:$0xff] }
  0x16   :  { %1131 = vmatprep.subr.bf16.mxu0 %v1130_v33  ;;  %v57_v23 = vld [vmem:[%s2232_s0 + $0x70] sm:$0xff]  ;;  %v1666_v25 = vld [vmem:[%s2233_s1] sm:$0xff]  ;;  %v1680_v29 = vld [vmem:[%s2233_s1 + $0x8] sm:$0xff]  ;;  %v109_v33 = vlaneseq }
  0x17   :  { %v1671_v26 = vld [vmem:[%s2233_s1 + $0x10] sm:$0xff]  ;;  %v378_v27 = vsel %vm119_vm0, %v1666_v25, 0.0  ;;  %v1685_v30 = vld [vmem:[%s2233_s1 + $0x18] sm:$0xff]  ;;  %v381_v31 = vsel %vm119_vm0, %v1680_v29, 0.0  ;;  %v107_v36 = vld [vmem:[%s2234_s3] sm:$0x3] }
  0x18   :  { %v384_v28 = vsel %vm119_vm0, %v1671_v26, 0.0  ;;  %379 = vadd.xlane.f32.xlu0 %v378_v27  ;;  %v387_v32 = vsel %vm119_vm0, %v1685_v30, 0.0  ;;  %v110_v34 = vshrl.u32 %v109_v33, 7  ;;  %v407_v33 = vld [vmem:[%s2235_s4 + $0x8] sm:$0xff] }
  0x19   :  { %1133 = vmatpush1.bf16.msra.mxu0 %v1132_v38  ;;  %385 = vadd.xlane.f32.xlu1 %v384_v28 }
  0x1a   :  { %1135 = vmatprep.subr.bf16.mxu0 %v1134_v39  ;;  %v1691_v35 = vsub.s32 0, %v110_v34  ;;  %v1696_v37 = vsub.s32 1, %v110_v34  ;;  %v409_v34 = vld [vmem:[%s2235_s4 + $0x18] sm:$0xff] }
  0x1c   :  { %382 = vadd.xlane.f32.xlu0 %v381_v31  ;;  %v112_v38 = vrot.slane %v107_v36, %v1691_v35  ;;  %v116_v40 = vrot.slane %v107_v36, %v1696_v37 }
  0x1d   :  { %1137 = vmatpush1.bf16.msra.mxu0 %v1136_v44  ;;  %388 = vadd.xlane.f32.xlu1 %v387_v32 }
  0x1e   :  { %1139 = vmatprep.subr.bf16.mxu0 %v1138_v45 }
  0x21   :  { %1141 = vmatpush1.bf16.msra.mxu0 %v1140_v50 }
  0x22   :  { %1143 = vmatprep.subr.bf16.mxu0 %v1142_v51 }
  0x25   :  { %1145 = vmatpush1.bf16.msra.mxu0 %v1144_v56 }
  0x26   :  { %1147 = vmatprep.subr.bf16.mxu0 %v1146_v57 }
  0x29   :  { %1149 = vmatpush1.bf16.msra.mxu0 %v1148_v62 }
  0x2a   :  { %1151 = vmatprep.subr.bf16.mxu0 %v1150_v63 }
  0x2d   :  { %1153 = vmatpush1.bf16.msra.mxu0 %v1152_v4 }
  0x2e   :  { %1155 = vmatprep.subr.bf16.mxu0 %v1154_v5 }
  0x31   :  { %1157 = vmatpush1.bf16.msra.mxu0 %v1156_v8 }
  0x34   :  { %209 = vmatmul.mubr.f32.vlgmr.msra.gmra.mrb[0].mxu0 %v43_v9 }
  0x35   :  { %981 = vmatprep.mubr.msk.f32.mxu0 %vm119_vm0, %v46_v10 }
  0x38   :  { %215 = vmatmul.mubr.f32.gmra.mrb[2].mxu0 %v45_v11 }
  0x39   :  { %982 = vmatprep.mubr.msk.f32.mxu0 %vm119_vm0, %v48_v12 }
  0x3c   :  { %221 = vmatmul.mubr.f32.gmra.mrb[4].mxu0 %v47_v13 }
  0x3d   :  { %983 = vmatprep.mubr.msk.f32.mxu0 %vm119_vm0, %v50_v14 }
  0x40   :  { %227 = vmatmul.mubr.f32.gmra.mrb[6].mxu0 %v49_v15 }
  0x41   :  { %984 = vmatprep.mubr.msk.f32.mxu0 %vm119_vm0, %v52_v16 }
  0x44   :  { %233 = vmatmul.mubr.f32.gmra.mrb[8].mxu0 %v51_v17 }
  0x45   :  { %985 = vmatprep.mubr.msk.f32.mxu0 %vm119_vm0, %v54_v18 }
  0x48   :  { %239 = vmatmul.mubr.f32.gmra.mrb[10].mxu0 %v53_v19 }
  0x49   :  { %986 = vmatprep.mubr.msk.f32.mxu0 %vm119_vm0, %v56_v20 }
  0x4c   :  { %245 = vmatmul.mubr.f32.gmra.mrb[12].mxu0 %v55_v21 }
  0x4d   :  { %987 = vmatprep.mubr.msk.f32.mxu0 %vm119_vm0, %v58_v22 }
  0x50   :  { %251 = vmatmul.mubr.f32.gmra.mrb[14].mxu0 %v57_v23 }
 0x107   :  { %v210_v39 = vpop.f32.mrb[0].mxu0 }
 0x108   :  { %v212_v41 = vpop.f32.mrb[1].mxu0  ;;  %v211_v42 = vadd.f32 %v210_v39, %v112_v38 }
 0x109   :  { %v213_v43 = vadd.f32 %v212_v41, %v116_v40 }
 0x10a   :  { %v257_v48 = vmax.f32 %v211_v42, 0.0 }
 0x10b   :  { %v216_v44 = vpop.f32.mrb[2].mxu0  ;;  %v258_v50 = vmax.f32 %v213_v43, 0.0  ;;  %v1174_v43 = vpack.c.bf16 %v409_v34, %v407_v33  ;;  %v444_v33 = vld [vmem:[%s2235_s4 + $0x130] sm:$0xff]  ;;  %v447_v34 = vld [vmem:[%s2235_s4 + $0x148] sm:$0xff] }
 0x10c   :  { %v217_v45 = vadd.f32 %v216_v44, %v112_v38  ;;  %v218_v46 = vpop.f32.mrb[3].mxu0  ;;  %v411_v44 = vld [vmem:[%s2235_s4 + $0x28] sm:$0xff] }
 0x10d   :  { %v219_v47 = vadd.f32 %v218_v46, %v116_v40 }
 0x10e   :  { %v259_v49 = vmax.f32 %v217_v45, 0.0  ;;  %v413_v45 = vld [vmem:[%s2235_s4 + $0x38] sm:$0xff] }
 0x10f   :  { %v260_v51 = vmax.f32 %v219_v47, 0.0  ;;  %v222_v52 = vpop.f32.mrb[4].mxu0  ;;  %v1178_v47 = vpack.c.bf16 %v413_v45, %v411_v44 }
 0x110   :  { %v224_v53 = vpop.f32.mrb[5].mxu0  ;;  %v1160_v54 = vpack.c.bf16 %v259_v49, %v257_v48  ;;  %v223_v56 = vadd.f32 %v222_v52, %v112_v38  ;;  %v410_v48 = vld [vmem:[%s2235_s4 + $0x20] sm:$0xff]  ;;  %v412_v49 = vld [vmem:[%s2235_s4 + $0x30] sm:$0xff] }
 0x111   :  { %v1158_v55 = vpack.c.bf16 %v260_v51, %v258_v50  ;;  %v225_v57 = vadd.f32 %v224_v53, %v116_v40  ;;  %v415_v50 = vld [vmem:[%s2235_s4 + $0x48] sm:$0xff]  ;;  %v417_v51 = vld [vmem:[%s2235_s4 + $0x58] sm:$0xff]  ;;  %v1180_v52 = vpack.c.bf16 %v412_v49, %v410_v48 }
 0x112   :  { %v261_v62 = vmax.f32 %v223_v56, 0.0  ;;  %v1182_v53 = vpack.c.bf16 %v417_v51, %v415_v50  ;;  %v419_v56 = vld [vmem:[%s2235_s4 + $0x68] sm:$0xff]  ;;  %v457_v49 = vld [vmem:[%s2235_s4 + $0x198] sm:$0xff] }
 0x113   :  { %v228_v58 = vpop.f32.mrb[6].mxu0  ;;  %1159 = vmatprep.subr.bf16.mxu1 %v1158_v55  ;;  %v262_v0 = vmax.f32 %v225_v57, 0.0  ;;  %v416_v55 = vld [vmem:[%s2235_s4 + $0x50] sm:$0xff]  ;;  %v455_v48 = vld [vmem:[%s2235_s4 + $0x188] sm:$0xff] }
 0x114   :  { %v229_v59 = vadd.f32 %v228_v58, %v112_v38  ;;  %v230_v60 = vpop.f32.mrb[7].mxu0  ;;  %1161 = vmatpush1.bf16.msra.mxu1 %v1160_v54  ;;  %v414_v54 = vld [vmem:[%s2235_s4 + $0x40] sm:$0xff]  ;;  %v1222_v51 = vpack.c.bf16 %v457_v49, %v455_v48 }
 0x115   :  { %v231_v61 = vadd.f32 %v230_v60, %v116_v40  ;;  %v1184_v57 = vpack.c.bf16 %v416_v55, %v414_v54  ;;  %v420_v60 = vld [vmem:[%s2235_s4 + $0x70] sm:$0xff]  ;;  %v459_v54 = vld [vmem:[%s2235_s4 + $0x1a8] sm:$0xff]  ;;  %v461_v55 = vld [vmem:[%s2235_s4 + $0x1b8] sm:$0xff] }
 0x116   :  { %v263_v63 = vmax.f32 %v229_v59, 0.0  ;;  %v418_v59 = vld [vmem:[%s2235_s4 + $0x60] sm:$0xff] }
 0x117   :  { %v264_v1 = vmax.f32 %v231_v61, 0.0  ;;  %v234_v2 = vpop.f32.mrb[8].mxu0  ;;  %v423_v61 = vld [vmem:[%s2235_s4 + $0x88] sm:$0xff] }
 0x118   :  { %v1164_v3 = vpack.c.bf16 %v263_v63, %v261_v62  ;;  %v236_v4 = vpop.f32.mrb[9].mxu0  ;;  %v235_v6 = vadd.f32 %v234_v2, %v112_v38  ;;  %v1188_v62 = vpack.c.bf16 %v420_v60, %v418_v59  ;;  %v427_v2 = vld [vmem:[%s2235_s4 + $0xa8] sm:$0xff]  ;;  %v465_v60 = vld [vmem:[%s2235_s4 + $0x1d8] sm:$0xff] }
 0x119   :  { %v1162_v5 = vpack.c.bf16 %v264_v1, %v262_v0  ;;  %v237_v7 = vadd.f32 %v236_v4, %v116_v40  ;;  %v422_v0 = vld [vmem:[%s2235_s4 + $0x80] sm:$0xff]  ;;  %v424_v1 = vld [vmem:[%s2235_s4 + $0x90] sm:$0xff]  ;;  %v463_v59 = vld [vmem:[%s2235_s4 + $0x1c8] sm:$0xff] }
 0x11a   :  { %v265_v12 = vmax.f32 %v235_v6, 0.0  ;;  %v426_v4 = vld [vmem:[%s2235_s4 + $0xa0] sm:$0xff]  ;;  %v431_v6 = vld [vmem:[%s2235_s4 + $0xc8] sm:$0xff] }
 0x11b   :  { %v240_v8 = vpop.f32.mrb[10].mxu0  ;;  %1163 = vmatprep.subr.bf16.mxu1 %v1162_v5  ;;  %v266_v14 = vmax.f32 %v237_v7, 0.0  ;;  %v428_v5 = vld [vmem:[%s2235_s4 + $0xb0] sm:$0xff] }
 0x11c   :  { %v241_v9 = vadd.f32 %v240_v8, %v112_v38  ;;  %v242_v10 = vpop.f32.mrb[11].mxu0  ;;  %1165 = vmatpush1.bf16.msra.mxu1 %v1164_v3  ;;  %v1196_v7 = vpack.c.bf16 %v428_v5, %v426_v4  ;;  %v580_v5 = vld [vmem:[%s2236_s6 + $0x8] sm:$0xff] }
 0x11d   :  { %v243_v11 = vadd.f32 %v242_v10, %v116_v40  ;;  %v432_v10 = vld [vmem:[%s2235_s4 + $0xd0] sm:$0xff] }
 0x11e   :  { %v267_v13 = vmax.f32 %v241_v9, 0.0  ;;  %v430_v9 = vld [vmem:[%s2235_s4 + $0xc0] sm:$0xff] }
 0x11f   :  { %v268_v15 = vmax.f32 %v243_v11, 0.0  ;;  %v246_v16 = vpop.f32.mrb[12].mxu0  ;;  %v435_v11 = vld [vmem:[%s2235_s4 + $0xe8] sm:$0xff] }
 0x120   :  { %v1168_v17 = vpack.c.bf16 %v267_v13, %v265_v12  ;;  %v248_v18 = vpop.f32.mrb[13].mxu0  ;;  %v247_v20 = vadd.f32 %v246_v16, %v112_v38  ;;  %v437_v12 = vld [vmem:[%s2235_s4 + $0xf8] sm:$0xff]  ;;  %v1200_v13 = vpack.c.bf16 %v432_v10, %v430_v9  ;;  %v436_v16 = vld [vmem:[%s2235_s4 + $0xf0] sm:$0xff]  ;;  %v584_v9 = vld [vmem:[%s2236_s6 + $0x28] sm:$0xff] }
 0x121   :  { %v1166_v19 = vpack.c.bf16 %v268_v15, %v266_v14  ;;  %v249_v21 = vadd.f32 %v248_v18, %v116_v40  ;;  %v1202_v14 = vpack.c.bf16 %v437_v12, %v435_v11  ;;  %v434_v15 = vld [vmem:[%s2235_s4 + $0xe0] sm:$0xff]  ;;  %v441_v18 = vld [vmem:[%s2235_s4 + $0x118] sm:$0xff] }
 0x122   :  { %v269_v31 = vmax.f32 %v247_v20, 0.0  ;;  %v586_v10 = vld [vmem:[%s2236_s6 + $0x38] sm:$0xff] }
 0x123   :  { %v252_v22 = vpop.f32.mrb[14].mxu0  ;;  %1167 = vmatprep.subr.bf16.mxu1 %v1166_v19  ;;  %v270_v36 = vmax.f32 %v249_v21, 0.0  ;;  %v1204_v19 = vpack.c.bf16 %v436_v16, %v434_v15  ;;  %v438_v21 = vld [vmem:[%s2235_s4 + $0x100] sm:$0xff]  ;;  %v1242_v12 = vpack.c.bf16 %v586_v10, %v584_v9  ;;  %v588_v15 = vld [vmem:[%s2236_s6 + $0x48] sm:$0xff]  ;;  %v590_v16 = vld [vmem:[%s2236_s6 + $0x58] sm:$0xff] }
 0x124   :  { %v253_v23 = vadd.f32 %v252_v22, %v112_v38  ;;  %v254_v27 = vpop.f32.mrb[15].mxu0  ;;  %1169 = vmatpush1.bf16.msra.mxu1 %v1168_v17  ;;  %v406_v38 = vld [vmem:[%s2235_s4] sm:$0xff]  ;;  %v439_v17 = vld [vmem:[%s2235_s4 + $0x108] sm:$0xff]  ;;  %v440_v22 = vld [vmem:[%s2235_s4 + $0x110] sm:$0xff] }
 0x125   :  { %v255_v28 = vadd.f32 %v254_v27, %v116_v40  ;;  %v408_v40 = vld [vmem:[%s2235_s4 + $0x10] sm:$0xff]  ;;  %v1206_v20 = vpack.c.bf16 %v441_v18, %v439_v17  ;;  %v445_v27 = vld [vmem:[%s2235_s4 + $0x138] sm:$0xff]  ;;  %v1246_v18 = vpack.c.bf16 %v590_v16, %v588_v15 }
 0x126   :  { %v271_v32 = vmax.f32 %v253_v23, 0.0  ;;  %v1176_v46 = vpack.c.bf16 %v408_v40, %v406_v38  ;;  %v443_v23 = vld [vmem:[%s2235_s4 + $0x128] sm:$0xff]  ;;  %v453_v40 = vld [vmem:[%s2235_s4 + $0x178] sm:$0xff] }
 0x127   :  { %v272_v39 = vmax.f32 %v255_v28, 0.0  ;;  %v1208_v28 = vpack.c.bf16 %v440_v22, %v438_v21  ;;  %v451_v38 = vld [vmem:[%s2235_s4 + $0x168] sm:$0xff]  ;;  %v594_v22 = vld [vmem:[%s2236_s6 + $0x78] sm:$0xff] }
 0x128   :  { %v1172_v41 = vpack.c.bf16 %v271_v32, %v269_v31  ;;  %v1210_v31 = vpack.c.bf16 %v445_v27, %v443_v23  ;;  %v442_v32 = vld [vmem:[%s2235_s4 + $0x120] sm:$0xff]  ;;  %v1218_v45 = vpack.c.bf16 %v453_v40, %v451_v38  ;;  %v592_v21 = vld [vmem:[%s2236_s6 + $0x68] sm:$0xff] }
 0x129   :  { %v1170_v42 = vpack.c.bf16 %v272_v39, %v270_v36  ;;  %v449_v36 = vld [vmem:[%s2235_s4 + $0x158] sm:$0xff]  ;;  %v1212_v39 = vpack.c.bf16 %v444_v33, %v442_v32  ;;  %v1250_v27 = vpack.c.bf16 %v594_v22, %v592_v21  ;;  %v596_v32 = vld [vmem:[%s2236_s6 + $0x88] sm:$0xff] }
 0x12a   :  { %v598_v33 = vld [vmem:[%s2236_s6 + $0x98] sm:$0xff] }
 0x12b   :  { %1171 = vmatprep.subr.bf16.mxu1 %v1170_v42  ;;  %v446_v42 = vld [vmem:[%s2235_s4 + $0x140] sm:$0xff] }
 0x12c   :  { %1173 = vmatpush1.bf16.msra.mxu1 %v1172_v41  ;;  %v1214_v41 = vpack.c.bf16 %v449_v36, %v447_v34  ;;  %v1254_v36 = vpack.c.bf16 %v598_v33, %v596_v32 }
 0x12d   :  { %1175 = vmatprep.subr.bf16.mxu1 %v1174_v43  ;;  %v448_v43 = vld [vmem:[%s2235_s4 + $0x150] sm:$0xff] }
 0x12e   :  { %v1216_v44 = vpack.c.bf16 %v448_v43, %v446_v42  ;;  %v600_v42 = vld [vmem:[%s2236_s6 + $0xa8] sm:$0xff]  ;;  %v602_v43 = vld [vmem:[%s2236_s6 + $0xb8] sm:$0xff] }
 0x12f   :  { %988 = vmatmul.mubr.msk.f32.vlgmr.msra.gmra.mrb[0].mxu1 %vm119_vm0, %v1666_v25  ;;  %v421_v25 = vld [vmem:[%s2235_s4 + $0x78] sm:$0xff]  ;;  %v1258_v40 = vpack.c.bf16 %v602_v43, %v600_v42 }
 0x130   :  { %359 = vmatprep.mubr.f32.mxu1 %v1391_v24  ;;  %1177 = vmatpush1.bf16.msra.mxu1 %v1176_v46  ;;  %v1186_v58 = vpack.c.bf16 %v421_v25, %v419_v56  ;;  %v450_v46 = vld [vmem:[%s2235_s4 + $0x160] sm:$0xff]  ;;  %v1226_v25 = vpack.c.bf16 %v461_v55, %v459_v54 }
 0x131   :  { %1179 = vmatprep.subr.bf16.mxu1 %v1178_v47  ;;  %v452_v47 = vld [vmem:[%s2235_s4 + $0x170] sm:$0xff] }
 0x132   :  { %v1220_v50 = vpack.c.bf16 %v452_v47, %v450_v46  ;;  %v604_v46 = vld [vmem:[%s2236_s6 + $0xc8] sm:$0xff]  ;;  %v606_v47 = vld [vmem:[%s2236_s6 + $0xd8] sm:$0xff] }
 0x133   :  { %989 = vmatmul.mubr.msk.f32.gmra.mrb[2].mxu1 %vm119_vm0, %v1680_v29  ;;  %v425_v29 = vld [vmem:[%s2235_s4 + $0x98] sm:$0xff]  ;;  %v1262_v49 = vpack.c.bf16 %v606_v47, %v604_v46 }
 0x134   :  { %365 = vmatprep.mubr.f32.mxu1 %v1391_v24  ;;  %1181 = vmatpush1.bf16.msra.mxu1 %v1180_v52  ;;  %v1190_v63 = vpack.c.bf16 %v425_v29, %v423_v61  ;;  %v454_v52 = vld [vmem:[%s2235_s4 + $0x180] sm:$0xff]  ;;  %v1230_v29 = vpack.c.bf16 %v465_v60, %v463_v59 }
 0x135   :  { %1183 = vmatprep.subr.bf16.mxu1 %v1182_v53  ;;  %v456_v53 = vld [vmem:[%s2235_s4 + $0x190] sm:$0xff] }
 0x136   :  { %v1224_v56 = vpack.c.bf16 %v456_v53, %v454_v52  ;;  %v608_v52 = vld [vmem:[%s2236_s6 + $0xe8] sm:$0xff]  ;;  %v610_v53 = vld [vmem:[%s2236_s6 + $0xf8] sm:$0xff] }
 0x137   :  { %990 = vmatmul.mubr.msk.f32.gmra.mrb[4].mxu1 %vm119_vm0, %v1671_v26  ;;  %v1192_v26 = vpack.c.bf16 %v424_v1, %v422_v0  ;;  %v467_v1 = vld [vmem:[%s2235_s4 + $0x1e8] sm:$0xff]  ;;  %v1266_v55 = vpack.c.bf16 %v610_v53, %v608_v52 }
 0x138   :  { %371 = vmatprep.mubr.f32.mxu1 %v1391_v24  ;;  %1185 = vmatpush1.bf16.msra.mxu1 %v1184_v57  ;;  %v429_v24 = vld [vmem:[%s2235_s4 + $0xb8] sm:$0xff]  ;;  %v458_v57 = vld [vmem:[%s2235_s4 + $0x1a0] sm:$0xff] }
 0x139   :  { %1187 = vmatprep.subr.bf16.mxu1 %v1186_v58  ;;  %v1194_v3 = vpack.c.bf16 %v429_v24, %v427_v2  ;;  %v460_v58 = vld [vmem:[%s2235_s4 + $0x1b0] sm:$0xff]  ;;  %v469_v2 = vld [vmem:[%s2235_s4 + $0x1f8] sm:$0xff] }
 0x13a   :  { %v1228_v61 = vpack.c.bf16 %v460_v58, %v458_v57  ;;  %v1234_v24 = vpack.c.bf16 %v469_v2, %v467_v1  ;;  %v612_v57 = vld [vmem:[%s2236_s6 + $0x108] sm:$0xff]  ;;  %v614_v58 = vld [vmem:[%s2236_s6 + $0x118] sm:$0xff]  ;;  %v615_v2 = vld [vmem:[%s2236_s6 + $0x120] sm:$0xff] }
 0x13b   :  { %991 = vmatmul.mubr.msk.f32.gmra.mrb[6].mxu1 %vm119_vm0, %v1685_v30  ;;  %v433_v30 = vld [vmem:[%s2235_s4 + $0xd8] sm:$0xff]  ;;  %v1270_v60 = vpack.c.bf16 %v614_v58, %v612_v57 }
 0x13c   :  { %1189 = vmatpush1.bf16.msra.mxu1 %v1188_v62  ;;  %v1198_v8 = vpack.c.bf16 %v433_v30, %v431_v6  ;;  %v462_v62 = vld [vmem:[%s2235_s4 + $0x1c0] sm:$0xff]  ;;  %v582_v6 = vld [vmem:[%s2236_s6 + $0x18] sm:$0xff] }
 0x13d   :  { %1191 = vmatprep.subr.bf16.mxu1 %v1190_v63  ;;  %v464_v63 = vld [vmem:[%s2235_s4 + $0x1d0] sm:$0xff]  ;;  %v579_v30 = vld [vmem:[%s2236_s6] sm:$0xff] }
 0x13e   :  { %v1232_v0 = vpack.c.bf16 %v464_v63, %v462_v62  ;;  %v616_v62 = vld [vmem:[%s2236_s6 + $0x128] sm:$0xff]  ;;  %v618_v63 = vld [vmem:[%s2236_s6 + $0x138] sm:$0xff] }
 0x13f   :  { %v1274_v1 = vpack.c.bf16 %v618_v63, %v616_v62  ;;  %v635_v62 = vld [vmem:[%s2236_s6 + $0x1c0] sm:$0xff]  ;;  %v637_v63 = vld [vmem:[%s2236_s6 + $0x1d0] sm:$0xff] }
 0x140   :  { %1193 = vmatpush1.bf16.msra.mxu1 %v1192_v26  ;;  %v466_v26 = vld [vmem:[%s2235_s4 + $0x1e0] sm:$0xff] }
 0x141   :  { %1195 = vmatprep.subr.bf16.mxu1 %v1194_v3  ;;  %v468_v3 = vld [vmem:[%s2235_s4 + $0x1f0] sm:$0xff] }
 0x142   :  { %v1236_v4 = vpack.c.bf16 %v468_v3, %v466_v26  ;;  %v620_v26 = vld [vmem:[%s2236_s6 + $0x148] sm:$0xff]  ;;  %v622_v3 = vld [vmem:[%s2236_s6 + $0x158] sm:$0xff] }
 0x144   :  { %1197 = vmatpush1.bf16.msra.mxu1 %v1196_v7  ;;  %v1238_v7 = vpack.c.bf16 %v582_v6, %v580_v5  ;;  %v1278_v5 = vpack.c.bf16 %v622_v3, %v620_v26  ;;  %v619_v6 = vld [vmem:[%s2236_s6 + $0x140] sm:$0xff]  ;;  %v641_v3 = vld [vmem:[%s2236_s6 + $0x1f0] sm:$0xff] }
 0x145   :  { %1199 = vmatprep.subr.bf16.mxu1 %v1198_v8  ;;  %v581_v8 = vld [vmem:[%s2236_s6 + $0x10] sm:$0xff]  ;;  %v639_v26 = vld [vmem:[%s2236_s6 + $0x1e0] sm:$0xff] }
 0x146   :  { %v1240_v11 = vpack.c.bf16 %v581_v8, %v579_v30  ;;  %1239 = vmatprep.subr.bf16.mxu0 %v1238_v7  ;;  %v621_v30 = vld [vmem:[%s2236_s6 + $0x150] sm:$0xff]  ;;  %v624_v7 = vld [vmem:[%s2236_s6 + $0x168] sm:$0xff]  ;;  %v626_v8 = vld [vmem:[%s2236_s6 + $0x178] sm:$0xff] }
 0x147   :  { %v1280_v9 = vpack.c.bf16 %v621_v30, %v619_v6  ;;  %v1282_v10 = vpack.c.bf16 %v626_v8, %v624_v7  ;;  %v749_v6 = vld [vmem:[%s2237_s8 + $0x8] sm:$0xff]  ;;  %v750_v30 = vld [vmem:[%s2237_s8 + $0x10] sm:$0xff]  ;;  %v751_v8 = vld [vmem:[%s2237_s8 + $0x18] sm:$0xff] }
 0x148   :  { %1201 = vmatpush1.bf16.msra.mxu1 %v1200_v13  ;;  %v583_v13 = vld [vmem:[%s2236_s6 + $0x20] sm:$0xff]  ;;  %1241 = vmatpush1.bf16.msra.mxu0 %v1240_v11 }
 0x149   :  { %1203 = vmatprep.subr.bf16.mxu1 %v1202_v14  ;;  %v585_v14 = vld [vmem:[%s2236_s6 + $0x30] sm:$0xff]  ;;  %1243 = vmatprep.subr.bf16.mxu0 %v1242_v12  ;;  %v623_v11 = vld [vmem:[%s2236_s6 + $0x160] sm:$0xff] }
 0x14a   :  { %v1244_v17 = vpack.c.bf16 %v585_v14, %v583_v13  ;;  %v625_v12 = vld [vmem:[%s2236_s6 + $0x170] sm:$0xff]  ;;  %v628_v13 = vld [vmem:[%s2236_s6 + $0x188] sm:$0xff]  ;;  %v630_v14 = vld [vmem:[%s2236_s6 + $0x198] sm:$0xff] }
 0x14b   :  { %v1284_v15 = vpack.c.bf16 %v625_v12, %v623_v11  ;;  %v1286_v16 = vpack.c.bf16 %v630_v14, %v628_v13  ;;  %v753_v11 = vld [vmem:[%s2237_s8 + $0x28] sm:$0xff]  ;;  %v754_v13 = vld [vmem:[%s2237_s8 + $0x30] sm:$0xff]  ;;  %v755_v14 = vld [vmem:[%s2237_s8 + $0x38] sm:$0xff] }
 0x14c   :  { %1205 = vmatpush1.bf16.msra.mxu1 %v1204_v19  ;;  %v587_v19 = vld [vmem:[%s2236_s6 + $0x40] sm:$0xff]  ;;  %1245 = vmatpush1.bf16.msra.mxu0 %v1244_v17 }
 0x14d   :  { %1207 = vmatprep.subr.bf16.mxu1 %v1206_v20  ;;  %v589_v20 = vld [vmem:[%s2236_s6 + $0x50] sm:$0xff]  ;;  %1247 = vmatprep.subr.bf16.mxu0 %v1246_v18  ;;  %v627_v17 = vld [vmem:[%s2236_s6 + $0x180] sm:$0xff] }
 0x14e   :  { %v1248_v23 = vpack.c.bf16 %v589_v20, %v587_v19  ;;  %v629_v18 = vld [vmem:[%s2236_s6 + $0x190] sm:$0xff]  ;;  %v632_v19 = vld [vmem:[%s2236_s6 + $0x1a8] sm:$0xff]  ;;  %v634_v20 = vld [vmem:[%s2236_s6 + $0x1b8] sm:$0xff] }
 0x14f   :  { %v1288_v21 = vpack.c.bf16 %v629_v18, %v627_v17  ;;  %v1290_v22 = vpack.c.bf16 %v634_v20, %v632_v19  ;;  %v757_v17 = vld [vmem:[%s2237_s8 + $0x48] sm:$0xff]  ;;  %v758_v19 = vld [vmem:[%s2237_s8 + $0x50] sm:$0xff]  ;;  %v759_v20 = vld [vmem:[%s2237_s8 + $0x58] sm:$0xff] }
 0x150   :  { %1209 = vmatpush1.bf16.msra.mxu1 %v1208_v28  ;;  %v591_v28 = vld [vmem:[%s2236_s6 + $0x60] sm:$0xff]  ;;  %1249 = vmatpush1.bf16.msra.mxu0 %v1248_v23 }
 0x151   :  { %1211 = vmatprep.subr.bf16.mxu1 %v1210_v31  ;;  %v593_v31 = vld [vmem:[%s2236_s6 + $0x70] sm:$0xff]  ;;  %1251 = vmatprep.subr.bf16.mxu0 %v1250_v27  ;;  %v631_v23 = vld [vmem:[%s2236_s6 + $0x1a0] sm:$0xff] }
 0x152   :  { %v1252_v34 = vpack.c.bf16 %v593_v31, %v591_v28  ;;  %v633_v27 = vld [vmem:[%s2236_s6 + $0x1b0] sm:$0xff]  ;;  %v636_v28 = vld [vmem:[%s2236_s6 + $0x1c8] sm:$0xff]  ;;  %v638_v31 = vld [vmem:[%s2236_s6 + $0x1d8] sm:$0xff] }
 0x153   :  { %v1292_v32 = vpack.c.bf16 %v633_v27, %v631_v23  ;;  %v1294_v33 = vpack.c.bf16 %v638_v31, %v636_v28  ;;  %v761_v23 = vld [vmem:[%s2237_s8 + $0x68] sm:$0xff]  ;;  %v470_v28 = vld [vmem:[%s2238_s5] sm:$0x3] }
 0x154   :  { %1213 = vmatpush1.bf16.msra.mxu1 %v1212_v39  ;;  %v595_v39 = vld [vmem:[%s2236_s6 + $0x80] sm:$0xff]  ;;  %1253 = vmatpush1.bf16.msra.mxu0 %v1252_v34  ;;  %v380_v34 = vpop.xlane.xlu0 %379  ;;  %v475_v31 = vrot.slane %v470_v28, %v1691_v35 }
 0x155   :  { %1215 = vmatprep.subr.bf16.mxu1 %v1214_v41  ;;  %v597_v41 = vld [vmem:[%s2236_s6 + $0x90] sm:$0xff]  ;;  %1255 = vmatprep.subr.bf16.mxu0 %v1254_v36  ;;  %v390_v36 = vadd.f32 1e-08, %v380_v34 }
 0x156   :  { %v1256_v38 = vpack.c.bf16 %v597_v41, %v595_v39  ;;  %v386_v41 = vpop.xlane.xlu1 %385 }
 0x157   :  { %1383 = vrcp.f32 %v390_v36  ;;  %v392_v43 = vadd.f32 1e-08, %v386_v41 }
 0x158   :  { %1217 = vmatpush1.bf16.msra.mxu1 %v1216_v44  ;;  %v599_v44 = vld [vmem:[%s2236_s6 + $0xa0] sm:$0xff]  ;;  %1257 = vmatpush1.bf16.msra.mxu0 %v1256_v38  ;;  %v383_v39 = vpop.xlane.xlu0 %382 }
 0x159   :  { %1219 = vmatprep.subr.bf16.mxu1 %v1218_v45  ;;  %v601_v45 = vld [vmem:[%s2236_s6 + $0xb0] sm:$0xff]  ;;  %1259 = vmatprep.subr.bf16.mxu0 %v1258_v40  ;;  %v391_v42 = vadd.f32 1e-08, %v383_v39 }
 0x15a   :  { %v1260_v48 = vpack.c.bf16 %v601_v45, %v599_v44  ;;  %v389_v38 = vpop.xlane.xlu1 %388 }
 0x15b   :  { %1385 = vrcp.f32 %v391_v42  ;;  %v393_v40 = vadd.f32 1e-08, %v389_v38 }
 0x15c   :  { %1221 = vmatpush1.bf16.msra.mxu1 %v1220_v50  ;;  %v603_v50 = vld [vmem:[%s2236_s6 + $0xc0] sm:$0xff]  ;;  %1261 = vmatpush1.bf16.msra.mxu0 %v1260_v48  ;;  %1387 = vrcp.f32 %v392_v43 }
 0x15d   :  { %1223 = vmatprep.subr.bf16.mxu1 %v1222_v51  ;;  %v605_v51 = vld [vmem:[%s2236_s6 + $0xd0] sm:$0xff]  ;;  %1263 = vmatprep.subr.bf16.mxu0 %v1262_v49  ;;  %1389 = vrcp.f32 %v393_v40 }
 0x15e   :  { %v1264_v54 = vpack.c.bf16 %v605_v51, %v603_v50 }
 0x160   :  { %1225 = vmatpush1.bf16.msra.mxu1 %v1224_v56  ;;  %v607_v56 = vld [vmem:[%s2236_s6 + $0xe0] sm:$0xff]  ;;  %1265 = vmatpush1.bf16.msra.mxu0 %v1264_v54 }
 0x161   :  { %1227 = vmatprep.subr.bf16.mxu1 %v1226_v25  ;;  %v609_v25 = vld [vmem:[%s2236_s6 + $0xf0] sm:$0xff]  ;;  %1267 = vmatprep.subr.bf16.mxu0 %v1266_v55  ;;  %v1384_v44 = vpop.eup %1383 }
 0x162   :  { %v1268_v59 = vpack.c.bf16 %v609_v25, %v607_v56 }
 0x164   :  { %1229 = vmatpush1.bf16.msra.mxu1 %v1228_v61  ;;  %v611_v61 = vld [vmem:[%s2236_s6 + $0x100] sm:$0xff]  ;;  %1269 = vmatpush1.bf16.msra.mxu0 %v1268_v59 }
 0x165   :  { %1231 = vmatprep.subr.bf16.mxu1 %v1230_v29  ;;  %v613_v29 = vld [vmem:[%s2236_s6 + $0x110] sm:$0xff]  ;;  %1271 = vmatprep.subr.bf16.mxu0 %v1270_v60  ;;  %v1386_v48 = vpop.eup %1385 }
 0x166   :  { %v1388_v53 = vpop.eup %1387 }
 0x167   :  { %v1390_v57 = vpop.eup %1389 }
 0x168   :  { %1233 = vmatpush1.bf16.msra.mxu1 %v1232_v0  ;;  %v1272_v0 = vpack.c.bf16 %v613_v29, %v611_v61 }
 0x169   :  { %1235 = vmatprep.subr.bf16.mxu1 %v1234_v24  ;;  %v617_v24 = vld [vmem:[%s2236_s6 + $0x130] sm:$0xff] }
 0x16a   :  { %1273 = vmatpush1.bf16.msra.mxu0 %v1272_v0  ;;  %v1296_v0 = vpack.c.bf16 %v637_v63, %v635_v62  ;;  %v862_v62 = vld [vmem:[%s2239_s10 + $0x10] sm:$0xff] }
 0x16b   :  { %1275 = vmatprep.subr.bf16.mxu0 %v1274_v1  ;;  %v640_v1 = vld [vmem:[%s2236_s6 + $0x1e8] sm:$0xff] }
 0x16c   :  { %1237 = vmatpush1.bf16.msra.mxu1 %v1236_v4  ;;  %v1276_v4 = vpack.c.bf16 %v617_v24, %v615_v2  ;;  %v642_v2 = vld [vmem:[%s2236_s6 + $0x1f8] sm:$0xff] }
 0x16d   :  { %v1298_v24 = vpack.c.bf16 %v642_v2, %v640_v1  ;;  %v864_v2 = vld [vmem:[%s2239_s10 + $0x20] sm:$0xff] }
 0x16e   :  { %1277 = vmatpush1.bf16.msra.mxu0 %v1276_v4  ;;  %v1300_v4 = vpack.c.bf16 %v641_v3, %v639_v26  ;;  %v866_v3 = vld [vmem:[%s2239_s10 + $0x30] sm:$0xff] }
 0x16f   :  { %1279 = vmatprep.subr.bf16.mxu0 %v1278_v5  ;;  %v748_v5 = vld [vmem:[%s2237_s8] sm:$0xff] }
 0x170   :  { %v1302_v7 = vpack.c.bf16 %v749_v6, %v748_v5  ;;  %v868_v6 = vld [vmem:[%s2239_s10 + $0x40] sm:$0xff] }
 0x172   :  { %1281 = vmatpush1.bf16.msra.mxu0 %v1280_v9  ;;  %v1306_v9 = vpack.c.bf16 %v751_v8, %v750_v30  ;;  %1303 = vmatprep.subr.bf16.mxu1 %v1302_v7  ;;  %v869_v30 = vld [vmem:[%s2239_s10 + $0x48] sm:$0xff]  ;;  %v870_v8 = vld [vmem:[%s2239_s10 + $0x50] sm:$0xff] }
 0x173   :  { %1283 = vmatprep.subr.bf16.mxu0 %v1282_v10  ;;  %v752_v10 = vld [vmem:[%s2237_s8 + $0x20] sm:$0xff] }
 0x174   :  { %v1310_v12 = vpack.c.bf16 %v753_v11, %v752_v10  ;;  %v872_v11 = vld [vmem:[%s2239_s10 + $0x60] sm:$0xff] }
 0x176   :  { %1285 = vmatpush1.bf16.msra.mxu0 %v1284_v15  ;;  %v1314_v15 = vpack.c.bf16 %v755_v14, %v754_v13  ;;  %v643_v14 = vld [vmem:[%s2240_s7] sm:$0x3] }
 0x177   :  { %1287 = vmatprep.subr.bf16.mxu0 %v1286_v16  ;;  %v756_v16 = vld [vmem:[%s2237_s8 + $0x40] sm:$0xff] }
 0x178   :  { %v1318_v18 = vpack.c.bf16 %v757_v17, %v756_v16  ;;  %v652_v16 = vrot.slane %v643_v14, %v1696_v37 }
 0x17a   :  { %1289 = vmatpush1.bf16.msra.mxu0 %v1288_v21  ;;  %v1322_v21 = vpack.c.bf16 %v759_v20, %v758_v19 }
 0x17b   :  { %1291 = vmatprep.subr.bf16.mxu0 %v1290_v22  ;;  %v760_v22 = vld [vmem:[%s2237_s8 + $0x60] sm:$0xff] }
 0x17c   :  { %v1326_v27 = vpack.c.bf16 %v761_v23, %v760_v22 }
 0x17e   :  { %1293 = vmatpush1.bf16.msra.mxu0 %v1292_v32  ;;  %v479_v32 = vrot.slane %v470_v28, %v1696_v37 }
 0x17f   :  { %1295 = vmatprep.subr.bf16.mxu0 %v1294_v33 }
 0x182   :  { %1297 = vmatpush1.bf16.msra.mxu0 %v1296_v0  ;;  %v863_v0 = vld [vmem:[%s2239_s10 + $0x18] sm:$0xff] }
 0x183   :  { %1299 = vmatprep.subr.bf16.mxu0 %v1298_v24  ;;  %v1338_v1 = vpack.c.bf16 %v863_v0, %v862_v62  ;;  %v865_v24 = vld [vmem:[%s2239_s10 + $0x28] sm:$0xff] }
 0x184   :  { %v1342_v26 = vpack.c.bf16 %v865_v24, %v864_v2 }
 0x186   :  { %1301 = vmatpush1.bf16.msra.mxu0 %v1300_v4  ;;  %v867_v4 = vld [vmem:[%s2239_s10 + $0x38] sm:$0xff] }
 0x187   :  { %v1346_v5 = vpack.c.bf16 %v867_v4, %v866_v3 }
 0x202   :  { %v355_v45 = vpop.f32.mrb[0].mxu1 }
 0x203   :  { %v357_v46 = vpop.f32.mrb[1].mxu1  ;;  %v398_v49 = vmul.f32 %v1384_v44, %v355_v45 }
 0x204   :  { %v399_v47 = vmul.f32 %v1384_v44, %v357_v46 }
 0x206   :  { %v361_v50 = vpop.f32.mrb[2].mxu1  ;;  %546 = vmatprep.mubr.f32.mxu1 %v399_v47 }
 0x207   :  { %v363_v51 = vpop.f32.mrb[3].mxu1  ;;  %547 = vmatmul.mubr.f32.vlgmr.msra.gmra.mrb[8].mxu1 %v398_v49  ;;  %v400_v54 = vmul.f32 %v1386_v48, %v361_v50 }
 0x208   :  { %v401_v52 = vmul.f32 %v1386_v48, %v363_v51  ;;  %1305 = vmatpush3.bf16.msra.mxu1 %v1302_v7  ;;  %v1350_v7 = vpack.c.bf16 %v869_v30, %v868_v6 }
 0x209   :  { %1307 = vmatprep.subr.bf16.mxu1 %v1306_v9 }
 0x20a   :  { %v367_v55 = vpop.f32.mrb[4].mxu1  ;;  %552 = vmatprep.mubr.f32.mxu1 %v401_v52 }
 0x20b   :  { %v369_v56 = vpop.f32.mrb[5].mxu1  ;;  %553 = vmatmul.mubr.f32.gmra.mrb[10].mxu1 %v400_v54  ;;  %v402_v58 = vmul.f32 %v1388_v53, %v367_v55 }
 0x20c   :  { %v403_v25 = vmul.f32 %v1388_v53, %v369_v56  ;;  %1309 = vmatpush3.bf16.msra.mxu1 %v1306_v9  ;;  %v871_v9 = vld [vmem:[%s2239_s10 + $0x58] sm:$0xff] }
 0x20d   :  { %1311 = vmatprep.subr.bf16.mxu1 %v1310_v12  ;;  %v1354_v10 = vpack.c.bf16 %v871_v9, %v870_v8 }
 0x20e   :  { %v373_v59 = vpop.f32.mrb[6].mxu1  ;;  %558 = vmatprep.mubr.f32.mxu1 %v403_v25 }
 0x20f   :  { %v375_v60 = vpop.f32.mrb[7].mxu1  ;;  %559 = vmatmul.mubr.f32.gmra.mrb[12].mxu1 %v402_v58  ;;  %v404_v29 = vmul.f32 %v1390_v57, %v373_v59  ;;  %v762_v58 = vld [vmem:[%s2237_s8 + $0x70] sm:$0xff]  ;;  %v763_v59 = vld [vmem:[%s2237_s8 + $0x78] sm:$0xff] }
 0x210   :  { %v405_v61 = vmul.f32 %v1390_v57, %v375_v60  ;;  %1313 = vmatpush3.bf16.msra.mxu1 %v1310_v12  ;;  %v1330_v60 = vpack.c.bf16 %v763_v59, %v762_v58  ;;  %v873_v12 = vld [vmem:[%s2239_s10 + $0x68] sm:$0xff] }
 0x211   :  { %1315 = vmatprep.subr.bf16.mxu1 %v1314_v15  ;;  %v1358_v13 = vpack.c.bf16 %v873_v12, %v872_v11 }
 0x212   :  { %564 = vmatprep.mubr.f32.mxu1 %v405_v61  ;;  %v860_v61 = vld [vmem:[%s2239_s10] sm:$0xff] }
 0x213   :  { %565 = vmatmul.mubr.f32.gmra.mrb[14].mxu1 %v404_v29  ;;  %v861_v29 = vld [vmem:[%s2239_s10 + $0x8] sm:$0xff] }
 0x214   :  { %1317 = vmatpush3.bf16.msra.mxu1 %v1314_v15  ;;  %v1334_v63 = vpack.c.bf16 %v861_v29, %v860_v61  ;;  %v648_v15 = vrot.slane %v643_v14, %v1691_v35 }
 0x215   :  { %1319 = vmatprep.subr.bf16.mxu1 %v1318_v18 }
 0x216   :  { %1335 = vmatprep.subr.bf16.mxu0 %v1334_v63 }
 0x218   :  { %1321 = vmatpush3.bf16.msra.mxu1 %v1318_v18 }
 0x219   :  { %1323 = vmatprep.subr.bf16.mxu1 %v1322_v21 }
 0x21c   :  { %1325 = vmatpush3.bf16.msra.mxu1 %v1322_v21 }
 0x21d   :  { %1327 = vmatprep.subr.bf16.mxu1 %v1326_v27 }
 0x220   :  { %1329 = vmatpush3.bf16.msra.mxu1 %v1326_v27 }
 0x221   :  { %1331 = vmatprep.subr.bf16.mxu1 %v1330_v60 }
 0x224   :  { %1333 = vmatpush3.bf16.msra.mxu1 %v1330_v60 }
 0x225   :  { %1366 = vmatprep.subr.bf16.mxu1 %v1334_v63 }
 0x2da   :  { %v548_v33 = vpop.f32.mrb[8].mxu1 }
 0x2db   :  { %v549_v34 = vadd.f32 %v548_v33, %v475_v31  ;;  %v550_v36 = vpop.f32.mrb[9].mxu1 }
 0x2dc   :  { %v551_v39 = vadd.f32 %v550_v36, %v479_v32 }
 0x2dd   :  { %v571_v43 = vmax.f32 %v549_v34, 0.0 }
 0x2de   :  { %v572_v41 = vmax.f32 %v551_v39, 0.0  ;;  %v554_v42 = vpop.f32.mrb[10].mxu1  ;;  %v874_v39 = vld [vmem:[%s2239_s10 + $0x70] sm:$0xff] }
 0x2df   :  { %v555_v38 = vadd.f32 %v554_v42, %v475_v31  ;;  %v556_v40 = vpop.f32.mrb[11].mxu1 }
 0x2e0   :  { %v557_v44 = vadd.f32 %v556_v40, %v479_v32  ;;  %719 = vmatprep.mubr.f32.mxu0 %v572_v41  ;;  %v875_v41 = vld [vmem:[%s2239_s10 + $0x78] sm:$0xff] }
 0x2e1   :  { %720 = vmatmul.mubr.f32.vlgmr.msra.gmra.mrb[16].mxu0 %v571_v43  ;;  %v573_v47 = vmax.f32 %v555_v38, 0.0  ;;  %v1362_v42 = vpack.c.bf16 %v875_v41, %v874_v39  ;;  %v992_v43 = vld [vmem:[%s2242_s9] ss:$0 sm:$0xff] }
 0x2e2   :  { %v574_v45 = vmax.f32 %v557_v44, 0.0  ;;  %v560_v46 = vpop.f32.mrb[12].mxu1  ;;  %1337 = vmatpush3.bf16.msra.mxu0 %v1334_v63 }
 0x2e3   :  { %v561_v48 = vadd.f32 %v560_v46, %v475_v31  ;;  %v562_v49 = vpop.f32.mrb[13].mxu1  ;;  %1339 = vmatprep.subr.bf16.mxu0 %v1338_v1 }
 0x2e4   :  { %v563_v50 = vadd.f32 %v562_v49, %v479_v32  ;;  %725 = vmatprep.mubr.f32.mxu0 %v574_v45 }
 0x2e5   :  { %726 = vmatmul.mubr.f32.gmra.mrb[18].mxu0 %v573_v47  ;;  %v575_v53 = vmax.f32 %v561_v48, 0.0 }
 0x2e6   :  { %v576_v51 = vmax.f32 %v563_v50, 0.0  ;;  %v566_v52 = vpop.f32.mrb[14].mxu1  ;;  %1341 = vmatpush3.bf16.msra.mxu0 %v1338_v1 }
 0x2e7   :  { %v567_v54 = vadd.f32 %v566_v52, %v475_v31  ;;  %v568_v55 = vpop.f32.mrb[15].mxu1  ;;  %1343 = vmatprep.subr.bf16.mxu0 %v1342_v26 }
 0x2e8   :  { %v569_v56 = vadd.f32 %v568_v55, %v479_v32  ;;  %731 = vmatprep.mubr.f32.mxu0 %v576_v51 }
 0x2e9   :  { %732 = vmatmul.mubr.f32.gmra.mrb[20].mxu0 %v575_v53  ;;  %v577_v57 = vmax.f32 %v567_v54, 0.0  ;;  %v993_v54 = vld [vmem:[%s2243_s11] ss:$0 sm:$0xff] }
 0x2ea   :  { %v578_v25 = vmax.f32 %v569_v56, 0.0  ;;  %1345 = vmatpush3.bf16.msra.mxu0 %v1342_v26 }
 0x2eb   :  { %1347 = vmatprep.subr.bf16.mxu0 %v1346_v5 }
 0x2ec   :  { %737 = vmatprep.mubr.f32.mxu0 %v578_v25 }
 0x2ed   :  { %738 = vmatmul.mubr.f32.gmra.mrb[22].mxu0 %v577_v57 }
 0x2ee   :  { %1349 = vmatpush3.bf16.msra.mxu0 %v1346_v5 }
 0x2ef   :  { %1351 = vmatprep.subr.bf16.mxu0 %v1350_v7 }
 0x2f2   :  { %1353 = vmatpush3.bf16.msra.mxu0 %v1350_v7 }
 0x2f3   :  { %1355 = vmatprep.subr.bf16.mxu0 %v1354_v10 }
 0x2f6   :  { %1357 = vmatpush3.bf16.msra.mxu0 %v1354_v10 }
 0x2f7   :  { %1359 = vmatprep.subr.bf16.mxu0 %v1358_v13 }
 0x2fa   :  { %1361 = vmatpush3.bf16.msra.mxu0 %v1358_v13 }
 0x2fb   :  { %1363 = vmatprep.subr.bf16.mxu0 %v1362_v42 }
 0x2fe   :  { %1365 = vmatpush3.bf16.msra.mxu0 %v1362_v42 }
 0x3b4   :  { %v721_v17 = vpop.f32.mrb[16].mxu0 }
 0x3b5   :  { %v722_v18 = vadd.f32 %v721_v17, %v648_v15  ;;  %v723_v19 = vpop.f32.mrb[17].mxu0 }
 0x3b6   :  { %v724_v20 = vadd.f32 %v723_v19, %v652_v16 }
 0x3b7   :  { %1066 = vmatprep.mubr.f32.mxu1 %v722_v18 }
 0x3b8   :  { %744 = vst [vmem:[%s2241_s13] sm:$0xff] %v724_v20  ;;  %v727_v21 = vpop.f32.mrb[18].mxu0 }
 0x3b9   :  { %v728_v22 = vadd.f32 %v727_v21, %v648_v15  ;;  %v729_v23 = vpop.f32.mrb[19].mxu0 }
 0x3ba   :  { %v730_v27 = vadd.f32 %v729_v23, %v652_v16 }
 0x3bb   :  { %1067 = vmatmul.mubr.f32.vlgmr.msra.gmra.mrb[16].mxu1 %v728_v22 }
 0x3bc   :  { %745 = vst [vmem:[%s2241_s13 + $0x8] sm:$0xff] %v730_v27  ;;  %v733_v35 = vpop.f32.mrb[20].mxu0  ;;  %1374 = vmatpush3.bf16.msra.mxu1 %v1334_v63 }
 0x3bd   :  { %v734_v37 = vadd.f32 %v733_v35, %v648_v15  ;;  %v735_v28 = vpop.f32.mrb[21].mxu0  ;;  %1367 = vmatprep.subr.bf16.mxu1 %v1338_v1 }
 0x3be   :  { %v736_v31 = vadd.f32 %v735_v28, %v652_v16 }
 0x3bf   :  { %1069 = vmatprep.mubr.f32.mxu1 %v734_v37 }
 0x3c0   :  { %746 = vst [vmem:[%s2241_s13 + $0x10] sm:$0xff] %v736_v31  ;;  %v739_v32 = vpop.f32.mrb[22].mxu0  ;;  %1375 = vmatpush3.bf16.msra.mxu1 %v1338_v1 }
 0x3c1   :  { %v740_v33 = vadd.f32 %v739_v32, %v648_v15  ;;  %v741_v34 = vpop.f32.mrb[23].mxu0  ;;  %1368 = vmatprep.subr.bf16.mxu1 %v1342_v26 }
 0x3c2   :  { %v742_v36 = vadd.f32 %v741_v34, %v652_v16 }
 0x3c3   :  { %1070 = vmatmul.mubr.f32.gmra.mrb[18].mxu1 %v740_v33 }
 0x3c4   :  { %747 = vst [vmem:[%s2241_s13 + $0x18] sm:$0xff] %v742_v36  ;;  %1376 = vmatpush3.bf16.msra.mxu1 %v1342_v26 }
 0x3c5   :  { %1369 = vmatprep.subr.bf16.mxu1 %v1346_v5 }
 0x3c8   :  { %1377 = vmatpush3.bf16.msra.mxu1 %v1346_v5 }
 0x3c9   :  { %1370 = vmatprep.subr.bf16.mxu1 %v1350_v7 }
 0x3cc   :  { %1378 = vmatpush3.bf16.msra.mxu1 %v1350_v7 }
 0x3cd   :  { %1371 = vmatprep.subr.bf16.mxu1 %v1354_v10 }
 0x3d0   :  { %1379 = vmatpush3.bf16.msra.mxu1 %v1354_v10 }
 0x3d1   :  { %1372 = vmatprep.subr.bf16.mxu1 %v1358_v13 }
 0x3d4   :  { %1380 = vmatpush3.bf16.msra.mxu1 %v1358_v13 }
 0x3d5   :  { %1373 = vmatprep.subr.bf16.mxu1 %v1362_v42 }
 0x3d8   :  { %1381 = vmatpush3.bf16.msra.mxu1 %v1362_v42 }
 0x48e   :  { %v1068_v38 = vpop.f32.mrb[16].mxu1 }
 0x48f   :  { %v843_v40 = vadd.f32 %v1068_v38, %v992_v43  ;;  %v837_v44 = vpop.f32.mrb[17].mxu1 }
 0x490   :  { %v838_v45 = vadd.f32 %v992_v43, %v837_v44 }
 0x491   :  { %v857_v47 = vmax.f32 %v843_v40, 0.0 }
 0x492   :  { %v856_v46 = vmax.f32 %v838_v45, 0.0 }
 0x494   :  { %1104 = vmatprep.mubr.f32.mxu0 %v856_v46 }
 0x495   :  { %1105 = vmatmul.mubr.f32.vlgmr.msra.gmra.mrb[24].mxu0 %v857_v47 }
 0x496   :  { %v1071_v48 = vpop.f32.mrb[18].mxu1 }
 0x497   :  { %v853_v49 = vadd.f32 %v1071_v48, %v992_v43  ;;  %v847_v50 = vpop.f32.mrb[19].mxu1 }
 0x498   :  { %v848_v51 = vadd.f32 %v992_v43, %v847_v50 }
 0x499   :  { %v859_v53 = vmax.f32 %v853_v49, 0.0 }
 0x49a   :  { %v858_v52 = vmax.f32 %v848_v51, 0.0 }
 0x49c   :  { %1107 = vmatprep.mubr.f32.mxu1 %v858_v52 }
 0x49d   :  { %1108 = vmatmul.mubr.f32.vlgmr.msra.gmra.mrb[20].mxu1 %v859_v53 }
 0x568   :  { %v1106_v55 = vpop.f32.mrb[24].mxu0 }
 0x569   :  { %v955_v56 = vadd.f32 %v1106_v55, %v993_v54  ;;  %v949_v25 = vpop.f32.mrb[25].mxu0 }
 0x56a   :  { %v950_v57 = vadd.f32 %v993_v54, %v949_v25 }
 0x56b   :  { %969 = vst [vmem:[%s2244_s12 + $0x8] sm:$0xff] %v955_v56 }
 0x56c   :  { %968 = vst [vmem:[%s2244_s12] sm:$0xff] %v950_v57 }
 0x570   :  { %v1109_v58 = vpop.f32.mrb[20].mxu1 }
 0x571   :  { %v965_v59 = vadd.f32 %v1109_v58, %v993_v54  ;;  %v959_v60 = vpop.f32.mrb[21].mxu1 }
 0x572   :  { %v960_v61 = vadd.f32 %v993_v54, %v959_v60 }
 0x573   :  { %971 = vst [vmem:[%s2244_s12 + $0x18] sm:$0xff] %v965_v59 }
 0x574   :  { %970 = vst [vmem:[%s2244_s12 + $0x10] sm:$0xff] %v960_v61 }

</bundles_post_ra>
